<compile_context>
chip_gen: v6e
topology: v6e:2x2x1
jax: 0.10.0
libtpu: 0.0.40
codegen_flags: <defaults>
</compile_context>

<pallas_src>
import functools

import jax
import jax.numpy as jnp
from jax import lax
from jax.experimental import pallas as pl
from jax.experimental.pallas import tpu as pltpu


def _round_up(x, m):
    return ((x + m - 1) // m) * m


def _vmem_capacity_bytes():
    """Best-effort query of per-core VMEM capacity; conservative fallback."""
    try:
        return int(pltpu.get_tpu_info().vmem_capacity_bytes)
    except Exception:  # older jax / query unavailable during tracing
        return 64 << 20  # v7x per-TensorCore VMEM (smallest current generation)


# ---------------------------------------------------------------------------
# Pallas kernel: one (batch, L-tile) grid step of the conv.
# ---------------------------------------------------------------------------
def _conv1d_kernel(xa_ref, xb_ref, w_ref, o_ref, *, taps, dilation):
    # xa_ref: (1, Cin, TL)    current L tile of the zero-padded input
    # xb_ref: (1, Cin, HALO)  first HALO columns of the *next* L tile (halo)
    # w_ref : (K, Cout, Cin)  weights, tap-major (Cin on lanes)
    # o_ref : (1, Cout, TL)   output tile, NCL layout, lane-dense last dim
    tl = o_ref.shape[-1]
    win = jnp.concatenate([xa_ref[0], xb_ref[0]], axis=-1)   # (Cin, TL + HALO)
    acc = jnp.zeros(o_ref.shape[1:], jnp.float32)            # (Cout, TL) f32
    for k in range(taps):                                    # K is tiny: unrolled
        off = k * dilation
        xk = win[:, off:off + tl]                            # static lane slice
        acc = acc + jnp.dot(w_ref[k], xk, preferred_element_type=jnp.float32)
    o_ref[0, :, :] = acc.astype(o_ref.dtype)


# ---------------------------------------------------------------------------
# Pallas fast path: stride == 1 conv1d, fused (no im2col in HBM).
# ---------------------------------------------------------------------------
def _conv1d_pallas(x, weight, *, padding, dilation, compute_dtype):
    B, Cin, L = x.shape
    Cout, _, K = weight.shape
    out_dtype = x.dtype
    cdtype = jnp.dtype(compute_dtype) if compute_dtype is not None else jnp.dtype(x.dtype)

    halo = dilation * (K - 1)
    Lp = L + 2 * padding
    L_out = Lp - halo
    assert L_out >= 1, "kernel does not fit in the (padded) input length"

    halo_blk = max(128, _round_up(max(halo, 1), 128))

    # Generation-aware lane tile: bigger VMEM -> bigger tile.
    cap = _vmem_capacity_bytes()
    tl_target = 512 if cap >= (96 << 20) else 256
    tl = min(tl_target, _round_up(L_out, 128))
    tl = _round_up(max(tl, halo_blk), halo_blk)              # tl % halo_blk == 0

    n_l = -(-L_out // tl)                                    # cdiv
    lp_pad = (n_l + 1) * tl                                  # room for last halo fetch
    halo_per_tl = tl // halo_blk

    # Zero padding: conv padding on the left, conv padding + tile/halo padding
    # on the right. Columns >= L_out of the padded output are discarded below.
    x_p = jnp.pad(x, ((0, 0), (0, 0), (padding, lp_pad - L - padding)))
    x_p = x_p.astype(cdtype)
    w_t = jnp.transpose(weight, (2, 0, 1)).astype(cdtype)    # (K, Cout, Cin), tiny

    kernel = functools.partial(_conv1d_kernel, taps=K, dilation=dilation)

    # Per-step VMEM footprint (double-buffered blocks) + in-body values,
    # clamped to the device capacity (never the hard-coded 64 MiB of v1).
    esz = jnp.dtype(cdtype).itemsize
    osz = jnp.dtype(out_dtype).itemsize
    needed = 2 * esz * (Cin * tl + Cin * halo_blk + K * Cout * Cin)
    needed += 2 * osz * Cout * tl
    needed += 4 * (Cin * (tl + halo_blk) + Cout * tl)        # win + acc (f32)
    vmem_limit = min(max(32 << 20, 2 * needed + (2 << 20)), int(cap * 0.9))

    out_padded = pl.pallas_call(
        kernel,
        out_shape=jax.ShapeDtypeStruct((B, Cout, n_l * tl), out_dtype),
        grid_spec=pltpu.PrefetchScalarGridSpec(
            num_scalar_prefetch=0,
            grid=(B, n_l),
            in_specs=[
                # current L tile of x
                pl.BlockSpec((1, Cin, tl), lambda b, l: (b, 0, l)),
                # halo: first halo_blk columns of the next L tile
                pl.BlockSpec((1, Cin, halo_blk),
                             lambda b, l: (b, 0, (l + 1) * halo_per_tl)),
                # full weight, resident across the grid
                pl.BlockSpec((K, Cout, Cin), lambda b, l: (0, 0, 0)),
            ],
            out_specs=pl.BlockSpec((1, Cout, tl), lambda b, l: (b, 0, l)),
        ),
        compiler_params=pltpu.CompilerParams(
            dimension_semantics=("parallel", "parallel"),
            vmem_limit_bytes=int(vmem_limit),
        ),
    )(x_p, x_p, w_t)

    return out_padded[:, :, :L_out]


# ---------------------------------------------------------------------------
# SOrthConv forward: conv1d(x, weight, bias=False)
# ---------------------------------------------------------------------------
_MIN_PALLAS_WORK = 1 << 21  # ~2M MACs: below this XLA's fused conv wins.


@functools.partial(
    jax.jit,
    static_argnames=("stride", "padding", "dilation", "compute_dtype", "prefer_pallas"),
)
def sorth_conv_forward(x, weight, *, stride=1, padding=0, dilation=1,
                       compute_dtype=None, prefer_pallas=None):
    """x: (B, C_in, L); weight: (C_out, C_in, K). Returns (B, C_out, L_out), dtype of x."""
    B, Cin, L = x.shape
    Cout, _, K = weight.shape
    Lp = L + 2 * padding
    L_out = (Lp - dilation * (K - 1) - 1) // stride + 1
    assert L_out >= 1

    work = B * L_out * Cout * Cin * K
    use_pallas = (stride == 1)
    if prefer_pallas is None:
        use_pallas = use_pallas and (work >= _MIN_PALLAS_WORK) and (L_out >= 128)
    else:
        use_pallas = use_pallas and bool(prefer_pallas)
    # TODO(synk): stride > 1 always uses the XLA conv fallback; a strided Pallas
    # fast path would need strided lane gathers inside the kernel.

    if use_pallas:
        return _conv1d_pallas(x, weight.astype(x.dtype), padding=padding,
                              dilation=dilation, compute_dtype=compute_dtype)

    return lax.conv_general_dilated(
        x, weight.astype(x.dtype),
        window_strides=(stride,),
        padding=[(padding, padding)],
        rhs_dilation=(dilation,),
        dimension_numbers=("NCH", "OIH", "NCH"),
    )


# ---------------------------------------------------------------------------
# Parameter init matching SOrthConv.reset_parameters:
#   normal(mean=0, std=get_M_shape(weight)[1] ** -0.5) == normal(0, C_out**-0.5)
# ---------------------------------------------------------------------------
def init_sorth_conv_weight(key, in_channels, out_channels, kernel_size,
                           dtype=jnp.float32):
    std = float(out_channels) ** (-0.5)
    w = std * jax.random.normal(key, (out_channels, in_channels, kernel_size),
                                dtype=jnp.float32)
    return w.astype(dtype)


if __name__ == "__main__":
    key = jax.random.PRNGKey(0)
    k1, k2, k3, k4 = jax.random.split(key, 4)

    def _ref_conv(x, w, stride, padding, dilation):
        return lax.conv_general_dilated(
            x, w, window_strides=(stride,), padding=[(padding, padding)],
            rhs_dilation=(dilation,), dimension_numbers=("NCH", "OIH", "NCH"))

    # --- Case 1: Pallas fast path (forced), small shapes, padding=1 -------
    B, C_IN, C_OUT, K, L = 2, 16, 32, 3, 300
    x = jax.random.normal(k1, (B, C_IN, L), dtype=jnp.float32)
    w = init_sorth_conv_weight(k2, C_IN, C_OUT, K)

    out = sorth_conv_forward(x, w, stride=1, padding=1, dilation=1,
                             prefer_pallas=True)
    out = jax.block_until_ready(out)
    ref = _ref_conv(x, w, 1, 1, 1)
    assert out.shape == ref.shape == (B, C_OUT, L), (out.shape, ref.shape)
    err = float(jnp.max(jnp.abs(out - ref)))
    assert jnp.allclose(out, ref, rtol=2e-3, atol=2e-3), err

    # --- Case 2: dilated conv through the Pallas path ---------------------
    out2 = sorth_conv_forward(x, w, stride=1, padding=2, dilation=2,
                              prefer_pallas=True)
    out2 = jax.block_until_ready(out2)
    ref2 = _ref_conv(x, w, 1, 2, 2)
    assert out2.shape == ref2.shape, (out2.shape, ref2.shape)
    err2 = float(jnp.max(jnp.abs(out2 - ref2)))
    assert jnp.allclose(out2, ref2, rtol=2e-3, atol=2e-3), err2

    # --- Case 3: tiny demo shape -> auto-dispatch takes the XLA fallback --
    Bs, Ci, Co, Ks, Ls = 2, 4, 8, 3, 16
    xs = jax.random.normal(k3, (Bs, Ci, Ls), dtype=jnp.float32)
    ws = init_sorth_conv_weight(k4, Ci, Co, Ks)
    outs = jax.block_until_ready(sorth_conv_forward(xs, ws))
    refs = _ref_conv(xs, ws, 1, 0, 1)
    assert outs.shape == (Bs, Co, Ls - Ks + 1), outs.shape
    assert jnp.allclose(outs, refs, rtol=1e-4, atol=1e-4), float(
        jnp.max(jnp.abs(outs - refs)))

    print("KERNEL_OK")
</pallas_src>

<mosaic_0001>
module attributes {stable_mosaic.version = 11 : i64} {
  func.func @_conv1d_kernel(%arg0: i32, %arg1: i32, %arg2: memref<1x16x256xf32, #tpu.memory_space<vmem>>, %arg3: memref<1x16x128xf32, #tpu.memory_space<vmem>>, %arg4: memref<3x32x16xf32, #tpu.memory_space<vmem>>, %arg5: memref<1x32x256xf32, #tpu.memory_space<vmem>>) attributes {dimension_semantics = [#tpu.dimension_semantics<parallel>, #tpu.dimension_semantics<parallel>], iteration_bounds = array<i64: 2, 2>, scalar_prefetch = 0 : i64, scratch_operands = 0 : i64, tpu.core_type = #tpu.core_type<tc>, window_params = [{transform_indices = @transform_0, window_bounds = array<i64: 1, 16, 256>}, {transform_indices = @transform_1, window_bounds = array<i64: 1, 16, 128>}, {pipeline_mode = #tpu.pipeline_mode<synchronous>, transform_indices = @transform_2, window_bounds = array<i64: 3, 32, 16>}, {transform_indices = @transform_3, window_bounds = array<i64: 1, 32, 256>}]} {
    %c0 = arith.constant 0 : index
    %c0_0 = arith.constant 0 : index
    %c0_1 = arith.constant 0 : index
    %0 = vector.load %arg2[%c0, %c0_0, %c0_1] : memref<1x16x256xf32, #tpu.memory_space<vmem>>, vector<1x16x256xf32>
    %1 = vector.shape_cast %0 : vector<1x16x256xf32> to vector<16x256xf32>
    %c0_2 = arith.constant 0 : index
    %c0_3 = arith.constant 0 : index
    %c0_4 = arith.constant 0 : index
    %2 = vector.load %arg3[%c0_2, %c0_3, %c0_4] : memref<1x16x128xf32, #tpu.memory_space<vmem>>, vector<1x16x128xf32>
    %3 = vector.shape_cast %2 : vector<1x16x128xf32> to vector<16x128xf32>
    %4 = tpu.concatenate %1, %3 in 1 : vector<16x256xf32>, vector<16x128xf32> -> vector<16x384xf32>
    %cst = arith.constant 0.000000e+00 : f32
    %5 = vector.broadcast %cst : f32 to vector<32x256xf32>
    %6 = vector.extract_strided_slice %4 {offsets = [0, 0], sizes = [16, 256], strides = [1, 1]} : vector<16x384xf32> to vector<16x256xf32>
    %c0_5 = arith.constant 0 : index
    %c0_6 = arith.constant 0 : index
    %c0_7 = arith.constant 0 : index
    %7 = vector.load %arg4[%c0_5, %c0_6, %c0_7] : memref<3x32x16xf32, #tpu.memory_space<vmem>>, vector<1x32x16xf32>
    %8 = vector.shape_cast %7 : vector<1x32x16xf32> to vector<32x16xf32>
    %cst_8 = arith.constant dense<0.000000e+00> : vector<32x256xf32>
    %9 = tpu.matmul %8, %6, %cst_8 {dimension_numbers = #tpu.dot_dimension_numbers<[1], [0], [0], [1], [0, 0, 1, 1], [], []>} : vector<32x16xf32>, vector<16x256xf32>, vector<32x256xf32> -> vector<32x256xf32>
    %10 = arith.addf %5, %9 : vector<32x256xf32>
    %11 = vector.extract_strided_slice %4 {offsets = [0, 1], sizes = [16, 256], strides = [1, 1]} : vector<16x384xf32> to vector<16x256xf32>
    %c1 = arith.constant 1 : index
    %c0_9 = arith.constant 0 : index
    %c0_10 = arith.constant 0 : index
    %12 = vector.load %arg4[%c1, %c0_9, %c0_10] : memref<3x32x16xf32, #tpu.memory_space<vmem>>, vector<1x32x16xf32>
    %13 = vector.shape_cast %12 : vector<1x32x16xf32> to vector<32x16xf32>
    %cst_11 = arith.constant dense<0.000000e+00> : vector<32x256xf32>
    %14 = tpu.matmul %13, %11, %cst_11 {dimension_numbers = #tpu.dot_dimension_numbers<[1], [0], [0], [1], [0, 0, 1, 1], [], []>} : vector<32x16xf32>, vector<16x256xf32>, vector<32x256xf32> -> vector<32x256xf32>
    %15 = arith.addf %10, %14 : vector<32x256xf32>
    %16 = vector.extract_strided_slice %4 {offsets = [0, 2], sizes = [16, 256], strides = [1, 1]} : vector<16x384xf32> to vector<16x256xf32>
    %c2 = arith.constant 2 : index
    %c0_12 = arith.constant 0 : index
    %c0_13 = arith.constant 0 : index
    %17 = vector.load %arg4[%c2, %c0_12, %c0_13] : memref<3x32x16xf32, #tpu.memory_space<vmem>>, vector<1x32x16xf32>
    %18 = vector.shape_cast %17 : vector<1x32x16xf32> to vector<32x16xf32>
    %cst_14 = arith.constant dense<0.000000e+00> : vector<32x256xf32>
    %19 = tpu.matmul %18, %16, %cst_14 {dimension_numbers = #tpu.dot_dimension_numbers<[1], [0], [0], [1], [0, 0, 1, 1], [], []>} : vector<32x16xf32>, vector<16x256xf32>, vector<32x256xf32> -> vector<32x256xf32>
    %20 = arith.addf %15, %19 : vector<32x256xf32>
    %c0_15 = arith.constant 0 : index
    %c0_16 = arith.constant 0 : index
    %c0_17 = arith.constant 0 : index
    %21 = vector.load %arg5[%c0_15, %c0_16, %c0_17] : memref<1x32x256xf32, #tpu.memory_space<vmem>>, vector<1x32x256xf32>
    %22 = vector.shape_cast %21 : vector<1x32x256xf32> to vector<32x256xf32>
    %23 = vector.shape_cast %20 : vector<32x256xf32> to vector<1x32x256xf32>
    tpu.vector_store %arg5[%c0_15, %c0_16, %c0_17], %23 {strides = array<i32>} : memref<1x32x256xf32, #tpu.memory_space<vmem>>, vector<1x32x256xf32>,
    return
  }
  func.func @transform_0(%arg0: i32, %arg1: i32) -> (i32, i32, i32) {
    %c0_i32 = arith.constant 0 : i32
    %c0_i32_0 = arith.constant 0 : i32
    return %arg0, %c0_i32, %arg1 : i32, i32, i32
  }
  func.func @transform_1(%arg0: i32, %arg1: i32) -> (i32, i32, i32) {
    %c1_i32 = arith.constant 1 : i32
    %0 = arith.addi %arg1, %c1_i32 : i32
    %c2_i32 = arith.constant 2 : i32
    %1 = arith.muli %0, %c2_i32 : i32
    %c0_i32 = arith.constant 0 : i32
    %c0_i32_0 = arith.constant 0 : i32
    return %arg0, %c0_i32, %1 : i32, i32, i32
  }
  func.func @transform_2(%arg0: i32, %arg1: i32) -> (i32, i32, i32) {
    %c0_i32 = arith.constant 0 : i32
    %c0_i32_0 = arith.constant 0 : i32
    %c0_i32_1 = arith.constant 0 : i32
    %c0_i32_2 = arith.constant 0 : i32
    return %c0_i32, %c0_i32_0, %c0_i32_1 : i32, i32, i32
  }
  func.func @transform_3(%arg0: i32, %arg1: i32) -> (i32, i32, i32) {
    %c0_i32 = arith.constant 0 : i32
    %c0_i32_0 = arith.constant 0 : i32
    return %arg0, %c0_i32, %arg1 : i32, i32, i32
  }
}

</mosaic_0001>

<bundles_post_ra>
// kernel: sorth_conv_forward.1
= control target key start
LH: loop header
LB: loop body
LE: loop exit
PB: predicated region body
PF: predicated region fallthrough
CT: control target
= control target key end

     0   :  { %s1032_s12 = smov 0   ;;  %s1034_s13 = smov 0   ;;  %s1270_s0 = inlined_call_operand.vmem [shape: f32[2,16,768], index: 0, kind: input, shape index: {}, may-alias: {0,1}]   ;;  %s1271_s1 = inlined_call_operand.vmem [shape: f32[2,16,768], index: 1, kind: input, shape index: {}, may-alias: {0,1}]   ;;  %s1272_s2 = inlined_call_operand.vmem [shape: f32[3,32,16], index: 2, kind: input, shape index: {}]   ;;  %s1273_s3 = inlined_call_operand.vmem [shape: f32[2,32,512], index: 3, kind: output, shape index: {}]  }
   0x1   :  { %s1036_s14 = smov 0   ;;  %s1038_s15 = smov 0  }
   0x2   :  { %s1040_s16 = smov 0   ;;  %s1042_s17 = smov 0  }
   0x3   :  { %s1044_s18 = smov 0   ;;  %s1046_s19 = smov 0  }
   0x4   :  { %s1048_s20 = smov 0  }
   0x5 LB: > { %s809_s21 = sadd.s32 4294967295, %s1007_s20   ;;  %s22_s22 = sadd.s32 1, %s999_s18  ;;  %s1007_s20 = sphi %s1048_s20, %s13_s20   ;;  %s1003_s19 = sphi %s1046_s19, %s1287_s19   ;;  %s999_s18 = sphi %s1044_s18, %s1286_s18   ;;  %s995_s17 = sphi %s1042_s17, %s1285_s17   ;;  %s991_s16 = sphi %s1040_s16, %s1284_s16   ;;  %s987_s15 = sphi %s1038_s15, %s1283_s15   ;;  %s983_s14 = sphi %s1036_s14, %s1282_s14   ;;  %s979_s13 = sphi %s1034_s13, %s1281_s13   ;;  %s975_s12 = sphi %s1032_s12, %s1280_s12  }
   0x6   : > { %p23_p0 = scmp.ge.s32.totalorder %s22_s22, 2  ;;  %s25_s23 = sadd.s32 1, %s1003_s19 }
   0x7   : > { %s34_s24 = sadd.s32 1, %s987_s15  ;;  %p41_p1 = scmp.ne.s32.totalorder %s987_s15, %s983_s14 }
   0x8   : > { %s1289_s22 = smov (%p23_p0, %s22_s22), 0  ;;  %s1291_s23 = smov (!%p23_p0, %s25_s23), %s1003_s19 }
   0x9   : > { %s30_s25 = ssub.s32 %s999_s18, %s1289_s22  ;;  %p42_p2 = scmp.eq.s32.totalorder %s1007_s20, 0 }
   0xa   : > { %p27_p3 = scmp.ge.s32.totalorder %s1291_s23, 2  ;;  %s1090_s26 = sshll.u32 %s999_s18, 1 }
   0xb   : > { %p1097_p4 = por %p42_p2, %p41_p1  ;;  %s854_s28 = sadd.s32 2, %s1090_s26 }
   0xc   : > { %s1293_s23 = smov (%p27_p3, %s1291_s23), 0  ;;  %s855_s29 = sshll.u32 %s1289_s22, 1 }
   0xd   : > { %1276 = sst [smem:[#allocation5_spill]] %s1293_s23  ;;  %s66_s30 = sadd.s32 1, %s979_s13 }
   0xe   : > { %s29_s4 = ssub.s32 %s1003_s19, %s1293_s23  ;;  %s856_s5 = sadd.s32 2, %s855_s29 }
   0xf   : > { %s31_s6 = sor.u32 %s30_s25, %s29_s4  ;;  %s62_s7 = ssub.s32 %s854_s28, %s856_s5 }
  0x10   : > { %p32_p5 = scmp.eq.s32.totalorder %s31_s6, 0  ;;  %s63_s8 = sor.u32 %s62_s7, %s29_s4 }
  0x11   : > { %p64_p6 = scmp.eq.s32.totalorder %s63_s8, 0  ;;  %p73_p7 = scmp.ne.s32.totalorder %s979_s13, %s975_s12 }
  0x12   : > { %s1111_s9 = scalar_select %p32_p5, %s987_s15, %s34_s24  }
  0x13   : > { %s1114_s10 = scalar_select %p64_p6, %s979_s13, %s66_s30  }
  0x14   : > { %p1118_p8 = por %p73_p7, %p42_p2  ;;  %p126_p9 = scmp.eq.s32.totalorder %s809_s21, 3 }
  0x15   : > { %p814_p11 = scmp.ge.s32.totalorder %s1007_s20, 4 }
  0x16   : > { %p1125_p10 = por %p126_p9, %p41_p1 }
  0x17   : > { %151 = sbr.rel (%p814_p11) target bundleno = 45 (0x2d), region = 20 }
  0x1c   : > { %154 = sbr.rel (!%p1097_p4) target bundleno = 37 (0x25), region = 24  ;;  %s156_s24 = sand.u32 (%p1097_p4), 1, %s987_s15  }
  0x1d   : > { %s861_s25 = smul.u32 (%p1097_p4), 12, %s1003_s19  ;;  %s815_s28 = sshll.u32 (%p1097_p4), %s156_s24, 5 }
  0x1e   : > { %s158_s6 = scalar_lea.vmem (%p1097_p4), [#allocation2], %s815_s28 }
  0x1f   : > { %s161_s29 = sadd.s32 (%p1097_p4), %s861_s25, %s1090_s26 }
  0x20   : > { %s817_s30 = sshll.u32 (%p1097_p4), %s161_s29, 3 }
  0x21   : > { %s163_s5 = scalar_lea.vmem %s1270_s0, %s817_s30 }
  0x22   : > { %v176_v0 = vld [vmem:[%s163_s5] sm:$0xff]  ;;  %v178_v1 = vld [vmem:[%s163_s5 + $0x8] sm:$0xff]  ;;  %v180_v2 = vld [vmem:[%s163_s5 + $0x30] sm:$0xff] }
  0x23   : > { %177 = vst [vmem:[%s158_s6] sm:$0xff] %v176_v0  ;;  %179 = vst [vmem:[%s158_s6 + $0x8] sm:$0xff] %v178_v1  ;;  %v182_v3 = vld [vmem:[%s163_s5 + $0x38] sm:$0xff] }
  0x24   : > { %181 = vst [vmem:[%s158_s6 + $0x10] sm:$0xff] %v180_v2  ;;  %183 = vst [vmem:[%s158_s6 + $0x18] sm:$0xff] %v182_v3 }
  0x25 PF: > { %189 = sbr.rel (!%p1118_p8) target bundleno = 45 (0x2d), region = 47  ;;  %s191_s27 = sand.u32 (%p1118_p8), 1, %s979_s13  }
  0x26   : > { %s735_s7 = smul.u32 (%p1118_p8), 12, %s1003_s19  ;;  %s818_s8 = sshll.u32 (%p1118_p8), %s191_s27, 4 }
  0x27   : > { %s193_s21 = scalar_lea.vmem (%p1118_p8), [#allocation3], %s818_s8 }
  0x28   : > { %s736_s24 = sadd.s32 (%p1118_p8), %s1090_s26, %s735_s7 }
  0x29   : > { %s820_s25 = sshll.u32 (%p1118_p8), %s736_s24, 3 }
  0x2a   : > { %s738_s28 = scalar_lea.vmem %s1271_s1, %s820_s25 }
  0x2b   : > { %v821_v4 = vld [vmem:[%s738_s28 + $0x10] sm:$0xff]  ;;  %v822_v5 = vld [vmem:[%s738_s28 + $0x40] sm:$0xff] }
  0x2c   : > { %231 = vst [vmem:[%s193_s21] sm:$0xff] %v821_v4  ;;  %233 = vst [vmem:[%s193_s21 + $0x8] sm:$0xff] %v822_v5 }
  0x2d PF: > { %p823_p12 = scmp.ge.s32.totalorder %s1007_s20, 1  ;;  %p238_p13 = scmp.lt.s32.totalorder %s1007_s20, 5 }
  0x2f   : > { %p239_p0 = pnand %p823_p12, %p238_p13 }
  0x30   : > { %s245_s26 = sand.u32 (!%p239_p0), 1, %s983_s14   ;;  %s252_s5 = sand.u32 (!%p239_p0), 1, %s975_s12  }
  0x31   : > { %242 = sbr.rel (%p239_p0) target bundleno = 412 (0x19c), region = 85  ;;  %s824_s11 = sshll.u32 (!%p239_p0), %s245_s26, 5 }
  0x32   : > { %s247_s4 = scalar_lea.vmem (!%p239_p0), [#allocation2], %s824_s11  ;;  %s1010_s6 = smov (!%p239_p0), 127  }
  0x33   : > { %s825_s27 = sshll.u32 (!%p239_p0), %s252_s5, 4  ;;  %s1011_s8 = smov (!%p239_p0), 126  }
  0x34   : > { %s254_s7 = scalar_lea.vmem (!%p239_p0), [#allocation3], %s825_s27 }
  0x36   : > { %v1009_v6 = vmov 0.0   ;;  %v285_v7 = vld [vmem:[%s247_s4 + $0x18] sm:$0xff]  ;;  %v284_v8 = vld [vmem:[%s247_s4 + $0x10] sm:$0xff]  ;;  %v283_v9 = vld [vmem:[%s247_s4 + $0x8] sm:$0xff]  ;;  %vm315_vm0 = vcmask 1039360   ;;  %vm324_vm1 = vcmask 130048  }
  0x37   : > { %413 = vmatprep.mubr.f32.mxu1 %v1009_v6  ;;  %401 = vmatprep.mubr.f32.mxu0 %v1009_v6  ;;  %v287_v10 = vld [vmem:[%s254_s7 + $0x8] sm:$0xff]  ;;  %v286_v11 = vld [vmem:[%s254_s7] sm:$0xff]  ;;  %vm544_vm2 = vcmask 1031168   ;;  %s848_s14 = sshll.u32 (%p1125_p10), %s991_s16, 1 }
  0x38   : > { %311 = vrot.lane.b32.xlu0 %v285_v7, %s1010_s6  ;;  %309 = vrot.lane.b32.xlu1 %v284_v8, %s1010_s6  ;;  %v282_v12 = vld [vmem:[%s247_s4] sm:$0xff]  ;;  %v829_v23 = vld [vmem:[%s1272_s2 + $0x30] sm:$0xff] }
  0x39   : > { %v827_v24 = vld [vmem:[%s1272_s2 + $0x20] sm:$0xff]  ;;  %v830_v28 = vld [vmem:[%s1272_s2 + $0x38] sm:$0xff]  ;;  %v828_v29 = vld [vmem:[%s1272_s2 + $0x28] sm:$0xff] }
  0x3a   : > { %v288_v33 = vld [vmem:[%s1272_s2] sm:$0xff]  ;;  %v289_v38 = vld [vmem:[%s1272_s2 + $0x8] sm:$0xff]  ;;  %v290_v40 = vld [vmem:[%s1272_s2 + $0x10] sm:$0xff] }
  0x3b   : > { %v839_v39 = vld [vmem:[%s1272_s2 + $0x40] sm:$0xff]  ;;  %v840_v41 = vld [vmem:[%s1272_s2 + $0x48] sm:$0xff]  ;;  %v291_v42 = vld [vmem:[%s1272_s2 + $0x18] sm:$0xff] }
  0x3c   : > { %313 = vrot.lane.b32.xlu0 %v287_v10, %s1010_s6  ;;  %305 = vrot.lane.b32.xlu1 %v283_v9, %s1010_s6  ;;  %v841_v43 = vld [vmem:[%s1272_s2 + $0x50] sm:$0xff]  ;;  %v842_v44 = vld [vmem:[%s1272_s2 + $0x58] sm:$0xff] }
  0x40   : > { %307 = vrot.lane.b32.xlu0 %v286_v11, %s1010_s6  ;;  %303 = vrot.lane.b32.xlu1 %v282_v12, %s1010_s6  ;;  %s826_s6 = sshll.u32 %s245_s26, 6  ;;  %s849_s26 = sshll.u32 (%p1125_p10), %s995_s17, 4 }
  0x41   : > { %s1218_s27 = scalar_lea.vmem [#allocation4], %s826_s6  ;;  %s679_s7 = sadd.s32 (%p1125_p10), %s849_s26, %s848_s14 }
  0x42   : > { %s850_s23 = sshll.u32 (%p1125_p10), %s679_s7, 3 }
  0x43   : > { %s681_s24 = scalar_lea.vmem (%p1125_p10), %s1273_s3, %s850_s23 }
  0x44   : > { %540 = vrot.lane.b32.xlu0 %v285_v7, %s1011_s8  ;;  %542 = vrot.lane.b32.xlu1 %v287_v10, %s1011_s8 }
  0x48   : > { %538 = vrot.lane.b32.xlu0 %v284_v8, %s1011_s8  ;;  %534 = vrot.lane.b32.xlu1 %v283_v9, %s1011_s8 }
  0x4c   : > { %536 = vrot.lane.b32.xlu0 %v286_v11, %s1011_s8  ;;  %532 = vrot.lane.b32.xlu1 %v282_v12, %s1011_s8 }
  0xaa   : > { %v312_v13 = vpop.permute.xlu0 %311  ;;  %v310_v14 = vpop.permute.xlu1 %309 }
  0xab   : > { %v318_v18 = vsel %vm315_vm0, %v310_v14, %v312_v13 }
  0xae   : > { %v314_v15 = vpop.permute.xlu0 %313  ;;  %v306_v16 = vpop.permute.xlu1 %305 }
  0xaf   : > { %v319_v17 = vsel %vm315_vm0, %v312_v13, %v314_v15 }
  0xb0   : > { %365 = vmatprep.subr.mxu0 %v319_v17  ;;  %857 = vmatprep.subr.mxu1 %v319_v17 }
  0xb1   : > { %366 = vmatpush1.msra.mxu0 %v318_v18  ;;  %859 = vmatpush1.msra.mxu1 %v318_v18 }
  0xb2   : > { %v308_v19 = vpop.permute.xlu0 %307  ;;  %v304_v20 = vpop.permute.xlu1 %303 }
  0xb3   : > { %v317_v21 = vsel %vm315_vm0, %v306_v16, %v308_v19  ;;  %v316_v22 = vsel %vm315_vm0, %v304_v20, %v306_v16 }
  0xb4   : > { %367 = vmatprep.subr.mxu0 %v317_v21  ;;  %858 = vmatprep.subr.mxu1 %v317_v21 }
  0xb5   : > { %368 = vmatpush1.msra.mxu0 %v316_v22  ;;  %860 = vmatpush1.msra.mxu1 %v316_v22 }
  0xb6   : > { %v541_v25 = vpop.permute.xlu0 %540  ;;  %833 = vmatmul.mubr.msk.f32.vlgmr.msra.gmra.mxu1 %vm324_vm1, %v829_v23  ;;  %v543_v26 = vpop.permute.xlu1 %542  ;;  %831 = vmatmul.mubr.msk.f32.vlgmr.msra.gmra.mxu0 %vm324_vm1, %v827_v24 }
  0xb7   : > { %v548_v27 = vsel %vm544_vm2, %v541_v25, %v543_v26  ;;  %419 = vmatprep.mubr.f32.mxu1 %v1009_v6  ;;  %466 = vmatprep.subr.mxu1 %v285_v7 }
  0xb8   : > { %593 = vmatprep.subr.mxu0 %v548_v27  ;;  %467 = vmatpush1.msra.mxu1 %v284_v8 }
  0xb9   : > { %468 = vmatprep.subr.mxu1 %v283_v9  ;;  %407 = vmatprep.mubr.f32.mxu0 %v1009_v6 }
  0xba   : > { %v539_v30 = vpop.permute.xlu0 %538  ;;  %834 = vmatmul.mubr.msk.f32.gmra.mxu1 %vm324_vm1, %v830_v28  ;;  %v535_v31 = vpop.permute.xlu1 %534  ;;  %832 = vmatmul.mubr.msk.f32.gmra.mxu0 %vm324_vm1, %v828_v29 }
  0xbb   : > { %v547_v32 = vsel %vm544_vm2, %v539_v30, %v541_v25  ;;  %469 = vmatpush1.msra.mxu1 %v282_v12  ;;  %502 = vmatprep.mubr.f32.mxu1 %v1009_v6 }
  0xbc   : > { %594 = vmatpush1.msra.mxu0 %v547_v32  ;;  %629 = vmatprep.mubr.f32.mxu0 %v1009_v6 }
  0xbe   : > { %v537_v34 = vpop.permute.xlu0 %536  ;;  %835 = vmatmul.mubr.msk.f32.vlgmr.msra.gmra.mxu1 %vm324_vm1, %v288_v33  ;;  %v533_v35 = vpop.permute.xlu1 %532 }
  0xbf   : > { %v545_v36 = vsel %vm544_vm2, %v533_v35, %v535_v31  ;;  %v546_v37 = vsel %vm544_vm2, %v535_v31, %v537_v34  ;;  %508 = vmatprep.mubr.f32.mxu1 %v1009_v6 }
  0xc0   : > { %595 = vmatprep.subr.mxu0 %v546_v37 }
  0xc1   : > { %596 = vmatpush1.msra.mxu0 %v545_v36 }
  0xc2   : > { %836 = vmatmul.mubr.msk.f32.gmra.mxu1 %vm324_vm1, %v289_v38  ;;  %843 = vmatmul.mubr.msk.f32.vlgmr.msra.gmra.mxu0 %vm324_vm1, %v839_v39 }
  0xc3   : > { %514 = vmatprep.mubr.f32.mxu1 %v1009_v6  ;;  %635 = vmatprep.mubr.f32.mxu0 %v1009_v6 }
  0xc6   : > { %837 = vmatmul.mubr.msk.f32.gmra.mxu1 %vm324_vm1, %v290_v40  ;;  %844 = vmatmul.mubr.msk.f32.gmra.mxu0 %vm324_vm1, %v840_v41 }
  0xc7   : > { %520 = vmatprep.mubr.f32.mxu1 %v1009_v6  ;;  %641 = vmatprep.mubr.f32.mxu0 %v1009_v6 }
  0xca   : > { %838 = vmatmul.mubr.msk.f32.gmra.mxu1 %vm324_vm1, %v291_v42  ;;  %845 = vmatmul.mubr.msk.f32.gmra.mxu0 %vm324_vm1, %v841_v43 }
  0xcb   : > { %647 = vmatprep.mubr.f32.mxu0 %v1009_v6 }
  0xce   : > { %846 = vmatmul.mubr.msk.f32.gmra.mxu0 %vm324_vm1, %v842_v44 }
 0x176   : > { %v415_v45 = vpop.f32.mrf.mxu1  ;;  %v403_v46 = vpop.f32.mrf.mxu0 }
 0x178   : > { %v417_v47 = vpop.f32.mrf.mxu1  ;;  %v405_v48 = vpop.f32.mrf.mxu0 }
 0x17a   : > { %v421_v49 = vpop.f32.mrf.mxu1  ;;  %v409_v51 = vpop.f32.mrf.mxu0 }
 0x17c   : > { %v423_v50 = vpop.f32.mrf.mxu1  ;;  %v411_v53 = vpop.f32.mrf.mxu0 }
 0x17e   : > { %v504_v52 = vpop.f32.mrf.mxu1 }
 0x17f   : > { %v505_v55 = vadd.f32 %v504_v52, %v403_v46 }
 0x180   : > { %v506_v54 = vpop.f32.mrf.mxu1 }
 0x181   : > { %v507_v58 = vadd.f32 %v506_v54, %v405_v48 }
 0x182   : > { %v510_v56 = vpop.f32.mrf.mxu1  ;;  %v631_v57 = vpop.f32.mrf.mxu0 }
 0x183   : > { %v654_v59 = vadd.f32 %v631_v57, %v505_v55  ;;  %v511_v62 = vadd.f32 %v510_v56, %v409_v51 }
 0x184   : > { %v512_v60 = vpop.f32.mrf.mxu1  ;;  %v633_v61 = vpop.f32.mrf.mxu0 }
 0x185   : > { %662 = vst [vmem:[%s1218_s27] sm:$0xff] %v654_v59  ;;  %v655_v63 = vadd.f32 %v633_v61, %v507_v58  ;;  %v513_v2 = vadd.f32 %v512_v60, %v411_v53 }
 0x186   : > { %v516_v0 = vpop.f32.mrf.mxu1  ;;  %v637_v1 = vpop.f32.mrf.mxu0 }
 0x187   : > { %663 = vst [vmem:[%s1218_s27 + $0x8] sm:$0xff] %v655_v63  ;;  %v656_v3 = vadd.f32 %v637_v1, %v511_v62  ;;  %v517_v6 = vadd.f32 %v516_v0, %v415_v45 }
 0x188   : > { %v518_v4 = vpop.f32.mrf.mxu1  ;;  %v639_v5 = vpop.f32.mrf.mxu0 }
 0x189   : > { %664 = vst [vmem:[%s1218_s27 + $0x10] sm:$0xff] %v656_v3  ;;  %v657_v7 = vadd.f32 %v639_v5, %v513_v2  ;;  %v519_v10 = vadd.f32 %v518_v4, %v417_v47 }
 0x18a   : > { %v522_v8 = vpop.f32.mrf.mxu1  ;;  %v643_v9 = vpop.f32.mrf.mxu0 }
 0x18b   : > { %665 = vst [vmem:[%s1218_s27 + $0x18] sm:$0xff] %v657_v7  ;;  %v658_v11 = vadd.f32 %v643_v9, %v517_v6  ;;  %v523_v14 = vadd.f32 %v522_v8, %v421_v49 }
 0x18c   : > { %v524_v12 = vpop.f32.mrf.mxu1  ;;  %v645_v13 = vpop.f32.mrf.mxu0  ;;  %v694_v21 = vld [vmem:[%s1218_s27] sm:$0xff] (%p1125_p10) }
 0x18d   : > { %666 = vst [vmem:[%s1218_s27 + $0x20] sm:$0xff] %v658_v11  ;;  %v659_v15 = vadd.f32 %v645_v13, %v519_v10  ;;  %v525_v17 = vadd.f32 %v524_v12, %v423_v50  ;;  %695 = vst [vmem:[%s681_s24] sm:$0xff] (%p1125_p10), %v694_v21 }
 0x18e   : > { %v649_v16 = vpop.f32.mrf.mxu0  ;;  %v696_v22 = vld [vmem:[%s1218_s27 + $0x8] sm:$0xff] (%p1125_p10) }
 0x18f   : > { %667 = vst [vmem:[%s1218_s27 + $0x28] sm:$0xff] %v659_v15  ;;  %v660_v18 = vadd.f32 %v649_v16, %v523_v14  ;;  %676 = sbr.rel (!%p1125_p10) target bundleno = 412 (0x19c), region = 97  ;;  %697 = vst [vmem:[%s681_s24 + $0x8] sm:$0xff] (%p1125_p10), %v696_v22 }
 0x190   : > { %v651_v19 = vpop.f32.mrf.mxu0  ;;  %v698_v23 = vld [vmem:[%s1218_s27 + $0x10] sm:$0xff] (%p1125_p10) }
 0x191   : > { %668 = vst [vmem:[%s1218_s27 + $0x30] sm:$0xff] %v660_v18  ;;  %v661_v20 = vadd.f32 %v651_v19, %v525_v17  ;;  %699 = vst [vmem:[%s681_s24 + $0x20] sm:$0xff] (%p1125_p10), %v698_v23 }
 0x192   : > { %v700_v24 = vld [vmem:[%s1218_s27 + $0x18] sm:$0xff] (%p1125_p10) }
 0x193   : > { %669 = vst [vmem:[%s1218_s27 + $0x38] sm:$0xff] %v661_v20  ;;  %701 = vst [vmem:[%s681_s24 + $0x28] sm:$0xff] (%p1125_p10), %v700_v24 }
 0x194   : > { %v702_v25 = vld [vmem:[%s1218_s27 + $0x20] sm:$0xff] }
 0x195   : > { %703 = vst [vmem:[%s681_s24 + $0x40] sm:$0xff] %v702_v25 }
 0x196   : > { %v704_v26 = vld [vmem:[%s1218_s27 + $0x28] sm:$0xff] }
 0x197   : > { %705 = vst [vmem:[%s681_s24 + $0x48] sm:$0xff] %v704_v26 }
 0x198   : > { %v706_v27 = vld [vmem:[%s1218_s27 + $0x30] sm:$0xff] }
 0x199   : > { %707 = vst [vmem:[%s681_s24 + $0x60] sm:$0xff] %v706_v27 }
 0x19a   : > { %v708_v28 = vld [vmem:[%s1218_s27 + $0x38] sm:$0xff] }
 0x19b   : > { %709 = vst [vmem:[%s681_s24 + $0x68] sm:$0xff] %v708_v28 }
 0x19c PF: > { %s13_s20 = sadd.s32 1, %s1007_s20   ;;  %s1279_s25 = sld [smem:[#allocation5_spill]] }
 0x19d   : > { %p10_p1 = scmp.ge.s32.totalorder %s13_s20, 6   ;;  %s1280_s12 = smov %s979_s13 }
 0x19e   : > { %s1281_s13 = smov %s1114_s10  ;;  %s1282_s14 = smov %s987_s15 }
 0x19f   : > { %s1283_s15 = smov %s1111_s9  ;;  %s1284_s16 = smov %s999_s18 }
 0x1a0   : > { %s1285_s17 = smov %s1003_s19  ;;  %s1286_s18 = smov %s1289_s22 }
 0x1a1   :  { %12 = sbr.rel (!%p10_p1) target bundleno = 5 (0x5), region = 161 }
 0x1a2   : > { %s1287_s19 = smov %s1279_s25 }

</bundles_post_ra>
